<compile_context>
chip_gen: v6e
topology: v6e:2x2x1
jax: 0.10.0
libtpu: 0.0.40
codegen_flags: <defaults>
</compile_context>

<pallas_src>
import functools

import jax
import jax.numpy as jnp
from jax import lax
from jax.experimental import pallas as pl
from jax.experimental.pallas import tpu as pltpu


_VMEM_LIMIT_BYTES = 48 * 1024 * 1024     # < 64 MiB (v7x physical), << 128 MiB (v5e/v6e)
_DEFAULT_BLOCK_ELEMS = 1 << 20           # ~4 MiB of f32 per block


def _choose_tiles(n_rows, m, itemsize, block_elems):
    """(TR, TM): full sublane groups on the row axis, lane-dense budget-sized M."""
    sub = 8 if itemsize >= 4 else (16 if itemsize == 2 else 32)
    tr = n_rows if n_rows <= sub else sub
    tm_full = pl.cdiv(m, 128) * 128
    tm = max(128, (block_elems // max(tr, 1)) // 128 * 128)
    tm = min(tm, tm_full)
    if tm == tm_full and tr < n_rows:
        # M fits in one lane tile: grow the row dimension to fill the budget.
        tr = max(sub, min((block_elems // tm) // sub * sub,
                          pl.cdiv(n_rows, sub) * sub))
    return tr, tm


def _choose_m_split(nmt, nrt):
    """Expose a 2nd parallel grid slot for pass 1 when the row axis has only
    one block (v7x has 2 TensorCores).  The split must divide the tile count so
    every chunk sees only full tiles except the single global tail tile."""
    if nrt == 1 and nmt >= 2 and nmt % 2 == 0:
        return 2
    return 1


def _reduce_stats_kernel(x_ref, mean_out_ref, m2_out_ref, mean_acc, m2_acc,
                         *, m_total, tm, tpg, nmt):
    """Per-row (mean, M2) over one M-chunk, accumulated across M-tiles (last
    grid axis, 'arbitrary') with Chan's parallel-variance merge."""
    p = pl.program_id(1)
    t = pl.program_id(2)

    @pl.when(t == 0)
    def _():
        mean_acc[...] = jnp.zeros_like(mean_acc)
        m2_acc[...] = jnp.zeros_like(m2_acc)

    x = x_ref[...].astype(jnp.float32)                       # (TR, TM)

    def merge(mean_b, m2_b, nb):
        # Count accumulated so far is derived from the grid position (all
        # previous tiles in this chunk are full) -> no VMEM counter needed.
        na = (t * tm).astype(jnp.float32)
        nab = na + nb
        w = nb / nab                                         # scalar
        delta = mean_b - mean_acc[...]
        mean_acc[...] = mean_acc[...] + delta * w
        m2_acc[...] = m2_acc[...] + m2_b + (delta * delta) * (na * w)

    def full_stats(xx):
        mb = jnp.sum(xx, axis=1, keepdims=True) * (1.0 / tm)
        cc = xx - mb
        return mb, jnp.sum(cc * cc, axis=1, keepdims=True)

    rem = m_total - (nmt - 1) * tm                           # static tail length
    if rem == tm:
        # M is an exact multiple of TM: no masking anywhere.
        mb, m2b = full_stats(x)
        merge(mb, m2b, float(tm))
    else:
        is_tail = (p * tpg + t) == (nmt - 1)

        @pl.when(jnp.logical_not(is_tail))
        def _():
            mb, m2b = full_stats(x)
            merge(mb, m2b, float(tm))

        @pl.when(is_tail)
        def _():
            # Only the single global tail tile pays for the lane mask.
            lane = lax.broadcasted_iota(jnp.int32, x.shape, 1)
            valid = lane < rem
            xm = jnp.where(valid, x, 0.0)
            mb = jnp.sum(xm, axis=1, keepdims=True) * (1.0 / rem)
            cc = jnp.where(valid, x - mb, 0.0)
            m2b = jnp.sum(cc * cc, axis=1, keepdims=True)
            merge(mb, m2b, float(rem))

    @pl.when(t == pl.num_programs(2) - 1)
    def _():
        mean_out_ref[...] = mean_acc[...]
        m2_out_ref[...] = m2_acc[...]


def _normalize_kernel(x_ref, scale_ref, shift_ref, y_ref):
    # One fused multiply-add per element in the compute dtype chosen by the
    # host (bf16 stays bf16 on v6e/v7x; everything else runs in f32).
    # NOTE: partial edge tiles also process the out-of-bounds garbage
    # rows/lanes; the results are discarded by the clipped output writeback
    # (no FP traps on TPU), so this is benign.
    x = x_ref[...].astype(scale_ref.dtype)
    y_ref[...] = (x * scale_ref[...] + shift_ref[...]).astype(y_ref.dtype)


@functools.partial(jax.jit,
                   static_argnames=("eps", "momentum", "affine", "block_elems"))
def _batch_norm3d_train(x, weight, bias, running_mean, running_var, *,
                        eps, momentum, affine, block_elems):
    N, C, D, H, W = x.shape
    M = D * H * W
    R = N * C
    x2 = x.reshape(R, M)            # contiguous view; rows are (sample, channel)

    itemsize = jnp.dtype(x.dtype).itemsize
    TR, TM = _choose_tiles(R, M, itemsize, block_elems)
    nrt = pl.cdiv(R, TR)
    nmt = pl.cdiv(M, TM)
    P = _choose_m_split(nmt, nrt)
    tpg = nmt // P                  # tiles per M-chunk (exact by construction)

    # ---- pass 1: per-(M-chunk, row) mean / M2 -------------------------------
    mean_pr, m2_pr = pl.pallas_call(
        functools.partial(_reduce_stats_kernel,
                          m_total=M, tm=TM, tpg=tpg, nmt=nmt),
        out_shape=(jax.ShapeDtypeStruct((P, R, 1), jnp.float32),
                   jax.ShapeDtypeStruct((P, R, 1), jnp.float32)),
        grid_spec=pltpu.PrefetchScalarGridSpec(
            num_scalar_prefetch=0,
            grid=(nrt, P, tpg),
            in_specs=[pl.BlockSpec((TR, TM),
                                   lambda r, p, t: (r, p * tpg + t))],
            out_specs=[pl.BlockSpec((None, TR, 1), lambda r, p, t: (p, r, 0)),
                       pl.BlockSpec((None, TR, 1), lambda r, p, t: (p, r, 0))],
            scratch_shapes=[pltpu.VMEM((TR, 1), jnp.float32),
                            pltpu.VMEM((TR, 1), jnp.float32)]),
        compiler_params=pltpu.CompilerParams(
            dimension_semantics=("parallel", "parallel", "arbitrary"),
            vmem_limit_bytes=_VMEM_LIMIT_BYTES),
    )(x2)

    # ---- tiny per-channel finalize (plain JAX, same jit) ---------------------
    chunk_counts = [min(M, (i + 1) * tpg * TM) - i * tpg * TM for i in range(P)]
    counts = jnp.asarray(chunk_counts, jnp.float32).reshape(P, 1, 1)
    mean_g = mean_pr[..., 0].reshape(P, N, C)
    m2_g = m2_pr[..., 0].reshape(P, N, C)

    total = float(N * M)
    mean = jnp.sum(mean_g * counts, axis=(0, 1)) / total                # (C,)
    m2 = (jnp.sum(m2_g, axis=(0, 1))
          + jnp.sum(counts * (mean_g - mean) ** 2, axis=(0, 1)))
    var = m2 / total                                                    # biased
    var_unbiased = m2 / max(total - 1.0, 1.0)

    inv_std = lax.rsqrt(var + eps)
    if affine:
        scale = weight * inv_std
        shift = bias - mean * scale
    else:
        scale = inv_std
        shift = -mean * inv_std

    new_running_mean = (1.0 - momentum) * running_mean + momentum * mean
    new_running_var = (1.0 - momentum) * running_var + momentum * var_unbiased

    compute_dtype = jnp.bfloat16 if x.dtype == jnp.bfloat16 else jnp.float32
    scale_rows = jnp.tile(scale, (N,)).reshape(R, 1).astype(compute_dtype)
    shift_rows = jnp.tile(shift, (N,)).reshape(R, 1).astype(compute_dtype)

    # ---- pass 2: normalize (one fused mul-add per element) -------------------
    y2 = pl.pallas_call(
        _normalize_kernel,
        out_shape=jax.ShapeDtypeStruct((R, M), x.dtype),
        grid_spec=pltpu.PrefetchScalarGridSpec(
            num_scalar_prefetch=0,
            grid=(nrt, nmt),
            in_specs=[pl.BlockSpec((TR, TM), lambda r, m: (r, m)),
                      pl.BlockSpec((TR, 1), lambda r, m: (r, 0)),
                      pl.BlockSpec((TR, 1), lambda r, m: (r, 0))],
            out_specs=pl.BlockSpec((TR, TM), lambda r, m: (r, m))),
        compiler_params=pltpu.CompilerParams(
            dimension_semantics=("parallel", "parallel"),
            vmem_limit_bytes=_VMEM_LIMIT_BYTES),
    )(x2, scale_rows, shift_rows)

    return y2.reshape(x.shape), new_running_mean, new_running_var


class RecurrentBatchNorm3d:
    """JAX/Pallas port of Recurrent_BatchNorm3d (forward pass, training mode)."""

    def __init__(self, num_features, T_max, eps=1e-5, momentum=0.1, affine=True,
                 block_elems=_DEFAULT_BLOCK_ELEMS):
        self.num_features = num_features
        self.T_max = T_max
        self.eps = float(eps)
        self.momentum = float(momentum)
        self.affine = affine
        self.block_elems = int(block_elems)
        # reset_parameters(): weight=0.1, bias=0, running_mean=0, running_var=1
        if affine:
            self.weight = jnp.full((num_features,), 0.1, dtype=jnp.float32)
            self.bias = jnp.zeros((num_features,), dtype=jnp.float32)
        else:
            self.weight = None
            self.bias = None
        self.running_mean = [jnp.zeros((num_features,), jnp.float32)
                             for _ in range(T_max)]
        self.running_var = [jnp.ones((num_features,), jnp.float32)
                            for _ in range(T_max)]

    def __call__(self, x, time):
        if x.ndim != 5:
            raise ValueError('expected 5D input (got {}D input)'.format(x.ndim))
        if time >= self.T_max:
            time = self.T_max - 1
        y, new_rm, new_rv = _batch_norm3d_train(
            x, self.weight, self.bias,
            self.running_mean[time], self.running_var[time],
            eps=self.eps, momentum=self.momentum, affine=self.affine,
            block_elems=self.block_elems)
        # PyTorch-style side effect on the time-indexed running-stat buffers.
        self.running_mean[time] = new_rm
        self.running_var[time] = new_rv
        return y


def _reference(x, weight, bias, eps):
    # pure-JAX reference of F.batch_norm(training=True) forward
    xf = x.astype(jnp.float32)
    mean = jnp.mean(xf, axis=(0, 2, 3, 4), keepdims=True)
    var = jnp.mean((xf - mean) ** 2, axis=(0, 2, 3, 4), keepdims=True)
    y = (xf - mean) / jnp.sqrt(var + eps)
    if weight is not None:
        y = y * weight.reshape(1, -1, 1, 1, 1) + bias.reshape(1, -1, 1, 1, 1)
    return y


if __name__ == "__main__":
    key = jax.random.PRNGKey(0)
    k1, k2, k3, k4 = jax.random.split(key, 4)

    # --- test A: default tiling (single full tile, full sublanes) -------------
    N, C, D, H, W = 2, 4, 8, 8, 8
    x = jax.random.normal(k1, (N, C, D, H, W), jnp.float32) * 2.0 + 0.5
    bn = RecurrentBatchNorm3d(num_features=C, T_max=3)
    y = jax.block_until_ready(bn(x, time=1))
    y_ref = _reference(x, bn.weight, bn.bias, bn.eps)
    assert y.shape == x.shape
    assert jnp.max(jnp.abs(y - y_ref)) < 1e-4

    mean_ref = jnp.mean(x, axis=(0, 2, 3, 4))
    var_ref = jnp.var(x, axis=(0, 2, 3, 4), ddof=1)
    assert jnp.max(jnp.abs(bn.running_mean[1] - 0.1 * mean_ref)) < 1e-4
    assert jnp.max(jnp.abs(bn.running_var[1] - (0.9 + 0.1 * var_ref))) < 1e-4

    # --- test B: tiny blocks -> multi-tile reduce, tail mask, P=2 M-split -----
    N, C, D, H, W = 1, 4, 6, 10, 7            # M = 420, not a multiple of 128
    x = jax.random.normal(k2, (N, C, D, H, W), jnp.float32) * 3.0 - 1.0
    bn = RecurrentBatchNorm3d(num_features=C, T_max=2, block_elems=512)
    y = jax.block_until_ready(bn(x, time=5))  # time clamps to T_max - 1
    y_ref = _reference(x, bn.weight, bn.bias, bn.eps)
    assert jnp.max(jnp.abs(y - y_ref)) < 1e-4

    # --- test C: ragged row block (R=15) + single partial M tile (M=120) ------
    N, C, D, H, W = 3, 5, 4, 6, 5
    x = jax.random.normal(k3, (N, C, D, H, W), jnp.float32) * 0.7 + 2.0
    bn = RecurrentBatchNorm3d(num_features=C, T_max=2, affine=False)
    y = jax.block_until_ready(bn(x, time=0))
    y_ref = _reference(x, None, None, bn.eps)
    assert jnp.max(jnp.abs(y - y_ref)) < 1e-4

    # --- test D: bf16 input (bf16 normalize path, 16-row sublane packing) -----
    N, C, D, H, W = 2, 8, 8, 8, 8
    x = (jax.random.normal(k4, (N, C, D, H, W), jnp.float32) * 2.0
         + 0.5).astype(jnp.bfloat16)
    bn = RecurrentBatchNorm3d(num_features=C, T_max=2)
    y = jax.block_until_ready(bn(x, time=0))
    y_ref = _reference(x, bn.weight, bn.bias, bn.eps)
    assert y.dtype == jnp.bfloat16
    assert jnp.max(jnp.abs(y.astype(jnp.float32) - y_ref)) < 2e-2

    print("KERNEL_OK")
</pallas_src>

<mosaic_0001>
module attributes {stable_mosaic.version = 11 : i64} {
  func.func @_reduce_stats_kernel(%arg0: i32, %arg1: i32, %arg2: i32, %arg3: memref<8x512xf32, #tpu.memory_space<vmem>>, %arg4: memref<1x8x1xf32, #tpu.memory_space<vmem>>, %arg5: memref<1x8x1xf32, #tpu.memory_space<vmem>>, %arg6: memref<8x1xf32, #tpu.memory_space<vmem>>, %arg7: memref<8x1xf32, #tpu.memory_space<vmem>>) attributes {dimension_semantics = [#tpu.dimension_semantics<parallel>, #tpu.dimension_semantics<parallel>, #tpu.dimension_semantics<arbitrary>], iteration_bounds = array<i64: 1, 1, 1>, scalar_prefetch = 0 : i64, scratch_operands = 2 : i64, tpu.core_type = #tpu.core_type<tc>, window_params = [{transform_indices = @transform_0, window_bounds = array<i64: 8, 512>}, {transform_indices = @transform_1, window_bounds = array<i64: 1, 8, 1>}, {transform_indices = @transform_2, window_bounds = array<i64: 1, 8, 1>}]} {
    %c0_i32 = arith.constant 0 : i32
    %0 = arith.cmpi eq, %arg2, %c0_i32 : i32
    %1 = arith.extui %0 : i1 to i32
    %c0_i32_0 = arith.constant 0 : i32
    %2 = arith.cmpi ne, %1, %c0_i32_0 : i32
    scf.if %2 {
      %cst_18 = arith.constant 0.000000e+00 : f32
      %35 = vector.broadcast %cst_18 : f32 to vector<8x1xf32>
      %c0_19 = arith.constant 0 : index
      %c0_20 = arith.constant 0 : index
      %36 = vector.load %arg6[%c0_19, %c0_20] : memref<8x1xf32, #tpu.memory_space<vmem>>, vector<8x1xf32>
      tpu.vector_store %arg6[%c0_19, %c0_20], %35 {strides = array<i32>} : memref<8x1xf32, #tpu.memory_space<vmem>>, vector<8x1xf32>,
      %cst_21 = arith.constant 0.000000e+00 : f32
      %37 = vector.broadcast %cst_21 : f32 to vector<8x1xf32>
      %c0_22 = arith.constant 0 : index
      %c0_23 = arith.constant 0 : index
      %38 = vector.load %arg7[%c0_22, %c0_23] : memref<8x1xf32, #tpu.memory_space<vmem>>, vector<8x1xf32>
      tpu.vector_store %arg7[%c0_22, %c0_23], %37 {strides = array<i32>} : memref<8x1xf32, #tpu.memory_space<vmem>>, vector<8x1xf32>,
    } else {
    }
    %c0 = arith.constant 0 : index
    %c0_1 = arith.constant 0 : index
    %3 = vector.load %arg3[%c0, %c0_1] : memref<8x512xf32, #tpu.memory_space<vmem>>, vector<8x512xf32>
    %cst = arith.constant dense<0.000000e+00> : vector<8xf32>
    %4 = vector.multi_reduction <add>, %3, %cst [1] : vector<8x512xf32> to vector<8xf32>
    %5 = vector.shape_cast %4 : vector<8xf32> to vector<8x1xf32>
    %cst_2 = arith.constant 0.001953125 : f32
    %6 = vector.broadcast %cst_2 : f32 to vector<8x1xf32>
    %7 = arith.mulf %5, %6 : vector<8x1xf32>
    %8 = vector.broadcast %7 : vector<8x1xf32> to vector<8x512xf32>
    %9 = arith.subf %3, %8 : vector<8x512xf32>
    %10 = arith.mulf %9, %9 : vector<8x512xf32>
    %cst_3 = arith.constant dense<0.000000e+00> : vector<8xf32>
    %11 = vector.multi_reduction <add>, %10, %cst_3 [1] : vector<8x512xf32> to vector<8xf32>
    %12 = vector.shape_cast %11 : vector<8xf32> to vector<8x1xf32>
    %c512_i32 = arith.constant 512 : i32
    %13 = arith.muli %arg2, %c512_i32 : i32
    %14 = arith.sitofp %13 : i32 to f32
    %cst_4 = arith.constant 5.120000e+02 : f32
    %15 = arith.addf %14, %cst_4 : f32
    %cst_5 = arith.constant 5.120000e+02 : f32
    %16 = arith.divf %cst_5, %15 : f32
    %c0_6 = arith.constant 0 : index
    %c0_7 = arith.constant 0 : index
    %17 = vector.load %arg6[%c0_6, %c0_7] : memref<8x1xf32, #tpu.memory_space<vmem>>, vector<8x1xf32>
    %18 = arith.subf %7, %17 : vector<8x1xf32>
    %c0_8 = arith.constant 0 : index
    %c0_9 = arith.constant 0 : index
    %19 = vector.load %arg6[%c0_8, %c0_9] : memref<8x1xf32, #tpu.memory_space<vmem>>, vector<8x1xf32>
    %20 = vector.broadcast %16 : f32 to vector<8x1xf32>
    %21 = arith.mulf %18, %20 : vector<8x1xf32>
    %22 = arith.addf %19, %21 : vector<8x1xf32>
    %c0_10 = arith.constant 0 : index
    %c0_11 = arith.constant 0 : index
    %23 = vector.load %arg6[%c0_10, %c0_11] : memref<8x1xf32, #tpu.memory_space<vmem>>, vector<8x1xf32>
    tpu.vector_store %arg6[%c0_10, %c0_11], %22 {strides = array<i32>} : memref<8x1xf32, #tpu.memory_space<vmem>>, vector<8x1xf32>,
    %c0_12 = arith.constant 0 : index
    %c0_13 = arith.constant 0 : index
    %24 = vector.load %arg7[%c0_12, %c0_13] : memref<8x1xf32, #tpu.memory_space<vmem>>, vector<8x1xf32>
    %25 = arith.addf %24, %12 : vector<8x1xf32>
    %26 = arith.mulf %18, %18 : vector<8x1xf32>
    %27 = arith.mulf %14, %16 : f32
    %28 = vector.broadcast %27 : f32 to vector<8x1xf32>
    %29 = arith.mulf %26, %28 : vector<8x1xf32>
    %30 = arith.addf %25, %29 : vector<8x1xf32>
    %c0_14 = arith.constant 0 : index
    %c0_15 = arith.constant 0 : index
    %31 = vector.load %arg7[%c0_14, %c0_15] : memref<8x1xf32, #tpu.memory_space<vmem>>, vector<8x1xf32>
    tpu.vector_store %arg7[%c0_14, %c0_15], %30 {strides = array<i32>} : memref<8x1xf32, #tpu.memory_space<vmem>>, vector<8x1xf32>,
    %c0_i32_16 = arith.constant 0 : i32
    %32 = arith.cmpi eq, %arg2, %c0_i32_16 : i32
    %33 = arith.extui %32 : i1 to i32
    %c0_i32_17 = arith.constant 0 : i32
    %34 = arith.cmpi ne, %33, %c0_i32_17 : i32
    scf.if %34 {
      %c0_18 = arith.constant 0 : index
      %c0_19 = arith.constant 0 : index
      %35 = vector.load %arg6[%c0_18, %c0_19] : memref<8x1xf32, #tpu.memory_space<vmem>>, vector<8x1xf32>
      %c0_20 = arith.constant 0 : index
      %c0_21 = arith.constant 0 : index
      %c0_22 = arith.constant 0 : index
      %36 = vector.load %arg4[%c0_20, %c0_21, %c0_22] : memref<1x8x1xf32, #tpu.memory_space<vmem>>, vector<1x8x1xf32>
      %37 = vector.shape_cast %36 : vector<1x8x1xf32> to vector<8x1xf32>
      %38 = vector.shape_cast %35 : vector<8x1xf32> to vector<1x8x1xf32>
      tpu.vector_store %arg4[%c0_20, %c0_21, %c0_22], %38 {strides = array<i32>} : memref<1x8x1xf32, #tpu.memory_space<vmem>>, vector<1x8x1xf32>,
      %c0_23 = arith.constant 0 : index
      %c0_24 = arith.constant 0 : index
      %39 = vector.load %arg7[%c0_23, %c0_24] : memref<8x1xf32, #tpu.memory_space<vmem>>, vector<8x1xf32>
      %c0_25 = arith.constant 0 : index
      %c0_26 = arith.constant 0 : index
      %c0_27 = arith.constant 0 : index
      %40 = vector.load %arg5[%c0_25, %c0_26, %c0_27] : memref<1x8x1xf32, #tpu.memory_space<vmem>>, vector<1x8x1xf32>
      %41 = vector.shape_cast %40 : vector<1x8x1xf32> to vector<8x1xf32>
      %42 = vector.shape_cast %39 : vector<8x1xf32> to vector<1x8x1xf32>
      tpu.vector_store %arg5[%c0_25, %c0_26, %c0_27], %42 {strides = array<i32>} : memref<1x8x1xf32, #tpu.memory_space<vmem>>, vector<1x8x1xf32>,
    } else {
    }
    return
  }
  func.func @transform_0(%arg0: i32, %arg1: i32, %arg2: i32) -> (i32, i32) {
    %c1_i32 = arith.constant 1 : i32
    %0 = arith.muli %arg1, %c1_i32 : i32
    %1 = arith.addi %0, %arg2 : i32
    %c0_i32 = arith.constant 0 : i32
    return %arg0, %1 : i32, i32
  }
  func.func @transform_1(%arg0: i32, %arg1: i32, %arg2: i32) -> (i32, i32, i32) {
    %c0_i32 = arith.constant 0 : i32
    %c0_i32_0 = arith.constant 0 : i32
    return %arg1, %arg0, %c0_i32 : i32, i32, i32
  }
  func.func @transform_2(%arg0: i32, %arg1: i32, %arg2: i32) -> (i32, i32, i32) {
    %c0_i32 = arith.constant 0 : i32
    %c0_i32_0 = arith.constant 0 : i32
    return %arg1, %arg0, %c0_i32 : i32, i32, i32
  }
}

module attributes {stable_mosaic.version = 11 : i64} {
  func.func @_normalize_kernel(%arg0: i32, %arg1: i32, %arg2: memref<8x512xf32, #tpu.memory_space<vmem>>, %arg3: memref<8x1xf32, #tpu.memory_space<vmem>>, %arg4: memref<8x1xf32, #tpu.memory_space<vmem>>, %arg5: memref<8x512xf32, #tpu.memory_space<vmem>>) attributes {dimension_semantics = [#tpu.dimension_semantics<parallel>, #tpu.dimension_semantics<parallel>], iteration_bounds = array<i64: 1, 1>, scalar_prefetch = 0 : i64, scratch_operands = 0 : i64, tpu.core_type = #tpu.core_type<tc>, window_params = [{transform_indices = @transform_0, window_bounds = array<i64: 8, 512>}, {transform_indices = @transform_1, window_bounds = array<i64: 8, 1>}, {transform_indices = @transform_2, window_bounds = array<i64: 8, 1>}, {transform_indices = @transform_3, window_bounds = array<i64: 8, 512>}]} {
    %c0 = arith.constant 0 : index
    %c0_0 = arith.constant 0 : index
    %0 = vector.load %arg2[%c0, %c0_0] : memref<8x512xf32, #tpu.memory_space<vmem>>, vector<8x512xf32>
    %c0_1 = arith.constant 0 : index
    %c0_2 = arith.constant 0 : index
    %1 = vector.load %arg3[%c0_1, %c0_2] : memref<8x1xf32, #tpu.memory_space<vmem>>, vector<8x1xf32>
    %2 = vector.broadcast %1 : vector<8x1xf32> to vector<8x512xf32>
    %3 = arith.mulf %0, %2 : vector<8x512xf32>
    %c0_3 = arith.constant 0 : index
    %c0_4 = arith.constant 0 : index
    %4 = vector.load %arg4[%c0_3, %c0_4] : memref<8x1xf32, #tpu.memory_space<vmem>>, vector<8x1xf32>
    %5 = vector.broadcast %4 : vector<8x1xf32> to vector<8x512xf32>
    %6 = arith.addf %3, %5 : vector<8x512xf32>
    %c0_5 = arith.constant 0 : index
    %c0_6 = arith.constant 0 : index
    %7 = vector.load %arg5[%c0_5, %c0_6] : memref<8x512xf32, #tpu.memory_space<vmem>>, vector<8x512xf32>
    tpu.vector_store %arg5[%c0_5, %c0_6], %6 {strides = array<i32>} : memref<8x512xf32, #tpu.memory_space<vmem>>, vector<8x512xf32>,
    return
  }
  func.func @transform_0(%arg0: i32, %arg1: i32) -> (i32, i32) {
    %c0_i32 = arith.constant 0 : i32
    return %arg0, %arg1 : i32, i32
  }
  func.func @transform_1(%arg0: i32, %arg1: i32) -> (i32, i32) {
    %c0_i32 = arith.constant 0 : i32
    %c0_i32_0 = arith.constant 0 : i32
    return %arg0, %c0_i32 : i32, i32
  }
  func.func @transform_2(%arg0: i32, %arg1: i32) -> (i32, i32) {
    %c0_i32 = arith.constant 0 : i32
    %c0_i32_0 = arith.constant 0 : i32
    return %arg0, %c0_i32 : i32, i32
  }
  func.func @transform_3(%arg0: i32, %arg1: i32) -> (i32, i32) {
    %c0_i32 = arith.constant 0 : i32
    return %arg0, %arg1 : i32, i32
  }
}

</mosaic_0001>

<bundles_post_ra>
// kernel: squeeze.3
= control target key start
LH: loop header
LB: loop body
LE: loop exit
PB: predicated region body
PF: predicated region fallthrough
CT: control target
= control target key end

     0   :  { %vm8_vm0 = vcmask 31744   ;;  %s42_s0 = inlined_call_operand.vmem [shape: f32[8], index: 0, kind: input, shape index: {}]   ;;  %s43_s1 = inlined_call_operand.vmem [shape: f32[2,4], index: 1, kind: output, shape index: {}]  }
   0x1   :  { %v5_v0 = vld [vmem:[%s42_s0] sm:$0x1]  ;;  %s25_s0 = smov 124  }
   0x2   :  { %6 = vst [vmem:[#allocation1] sm:$0x1] %v5_v0 }
   0x9   :  { %v10_v1 = vld [vmem:[#allocation1] sm:$0x1]  }
   0xa   :  { %v7_v2 = vld [vmem:[#allocation1] sm:$0x1]   ;;  %11 = vrot.lane.b32.xlu0 %v10_v1, %s25_s0 }
   0xb   :  { %9 = vst.msk [vmem:[#allocation0] sm:$0x1] %vm8_vm0, %v7_v2  }
  0x7c   :  { %v12_v3 = vpop.permute.xlu0 %11  }
  0x7d   :  { %15 = vst.msk [vmem:[#allocation0 + $0x1] sm:$0x1] %vm8_vm0, %v12_v3  }
  0x84   :  { %v20_v4 = vld [vmem:[#allocation0] sm:$0x3] }
  0x85   :  { %23 = vst [vmem:[%s43_s1] sm:$0x3] %v20_v4 }

// kernel: tile.18
= control target key start
LH: loop header
LB: loop body
LE: loop exit
PB: predicated region body
PF: predicated region fallthrough
CT: control target
= control target key end

     0   :  { %s22_s0 = inlined_call_operand.vmem [shape: f32[4], index: 0, kind: input, shape index: {}]   ;;  %s23_s1 = inlined_call_operand.vmem [shape: f32[2,4], index: 1, kind: output, shape index: {}]  }
   0x1   :  { %v4_v0 = vld [vmem:[%s22_s0] ss:$0 sm:$0xff] }
   0x2   :  { %5 = vst [vmem:[%s23_s1] sm:$0x3] %v4_v0 }

// kernel: tile.0
= control target key start
LH: loop header
LB: loop body
LE: loop exit
PB: predicated region body
PF: predicated region fallthrough
CT: control target
= control target key end

     0   :  { %s35_s8 = smov 125   ;;  %vm8_vm0 = vcmask 7168   ;;  %s36_s11 = smov 126   ;;  %s62_s0 = inlined_call_operand.vmem [shape: f32[2,4], index: 0, kind: input, shape index: {}]   ;;  %s63_s1 = inlined_call_operand.vmem [shape: f32[8,1], index: 1, kind: output, shape index: {}]  }
   0x1   :  { %v5_v0 = vld [vmem:[%s62_s0] sm:$0x3]  ;;  %s34_s0 = smov 127  }
   0x2   :  { %6 = vst [vmem:[#allocation0] sm:$0x3] %v5_v0 }
   0x9   :  { %v10_v1 = vld [vmem:[#allocation0] sm:$0x3]  }
   0xa   :  { %v22_v2 = vld [vmem:[#allocation0] sm:$0x3]   ;;  %11 = vrot.lane.b32.xlu0 %v10_v1, %s34_s0 }
   0xb   :  { %23 = vrot.lane.b32.xlu1 %v22_v2, %s35_s8  ;;  %v7_v3 = vld [vmem:[#allocation0] sm:$0x3]  }
   0xc   :  { %v16_v4 = vld [vmem:[#allocation0] sm:$0x3]   ;;  %9 = vst.msk [vmem:[%s63_s1] ss:$4 sm:$0x3] %vm8_vm0, %v7_v3  }
   0xe   :  { %17 = vrot.lane.b32.xlu0 %v16_v4, %s36_s11 }
  0x7c   :  { %v12_v5 = vpop.permute.xlu0 %11  }
  0x7d   :  { %v24_v6 = vpop.permute.xlu1 %23   ;;  %28 = vst.msk [vmem:[%s63_s1 + $0x1] ss:$4 sm:$0x3] %vm8_vm0, %v12_v5  }
  0x7e   :  { %30 = vst.msk [vmem:[%s63_s1 + $0x3] ss:$4 sm:$0x3] %vm8_vm0, %v24_v6  }
  0x80   :  { %v18_v7 = vpop.permute.xlu0 %17  }
  0x81   :  { %29 = vst.msk [vmem:[%s63_s1 + $0x2] ss:$4 sm:$0x3] %vm8_vm0, %v18_v7  }

// kernel: _batch_norm3d_train.2
= control target key start
LH: loop header
LB: loop body
LE: loop exit
PB: predicated region body
PF: predicated region fallthrough
CT: control target
= control target key end

     0   :  { %vm36_vm0 = vcmask 7168   ;;  %v106_v7 = vmov 0.0   ;;  %s146_s0 = inlined_call_operand.vmem [shape: f32[8,512], index: 0, kind: input, shape index: {}]   ;;  %s147_s1 = inlined_call_operand.vmem [shape: f32[1,8,1], index: 1, kind: output, shape index: {0}]   ;;  %s148_s2 = inlined_call_operand.vmem [shape: f32[1,8,1], index: 2, kind: output, shape index: {1}]  }
   0x1   :  { %v39_v0 = vld [vmem:[%s146_s0] sm:$0xff]  ;;  %v40_v1 = vld [vmem:[%s146_s0 + $0x8] sm:$0xff]  ;;  %v41_v2 = vld [vmem:[%s146_s0 + $0x10] sm:$0xff]  ;;  %37 = vst.msk [vmem:[#allocation2] sm:$0xff] %vm36_vm0, %v106_v7 }
   0x2   :  { %v43_v3 = vadd.f32 %v40_v1, %v39_v0  ;;  %v42_v4 = vld [vmem:[%s146_s0 + $0x18] sm:$0xff]  ;;  %38 = vst.msk [vmem:[#allocation3] sm:$0xff] %vm36_vm0, %v106_v7 }
   0x4   :  { %v44_v5 = vadd.f32 %v43_v3, %v41_v2 }
   0x6   :  { %v45_v6 = vadd.f32 %v44_v5, %v42_v4 }
   0x8   :  { %46 = vadd.xlane.f32.xlu0 %v45_v6  ;;  %v69_v10 = vld [vmem:[#allocation2] sm:$0xff] }
   0x9   :  { %v76_v26 = vld [vmem:[#allocation3] sm:$0xff] }
  0x91   :  { %v47_v8 = vpop.xlane.xlu0 %46 }
  0x92   :  { %v48_v9 = vmul.f32 0.001953125, %v47_v8 }
  0x94   :  { %v49_v11 = vsub.f32 %v39_v0, %v48_v9  ;;  %v50_v12 = vsub.f32 %v40_v1, %v48_v9  ;;  %v51_v13 = vsub.f32 %v41_v2, %v48_v9  ;;  %v70_v14 = vsub.f32 %v48_v9, %v69_v10 }
  0x95   :  { %v52_v15 = vsub.f32 %v42_v4, %v48_v9 }
  0x96   :  { %v53_v16 = vmul.f32 %v49_v11, %v49_v11  ;;  %v54_v17 = vmul.f32 %v50_v12, %v50_v12  ;;  %v73_v18 = vadd.f32 %v70_v14, %v69_v10  ;;  %v55_v19 = vmul.f32 %v51_v13, %v51_v13 }
  0x97   :  { %v56_v21 = vmul.f32 %v52_v15, %v52_v15  ;;  %v78_v25 = vmul.f32 %v70_v14, %v70_v14 }
  0x98   :  { %v57_v20 = vadd.f32 %v54_v17, %v53_v16  ;;  %75 = vst.msk [vmem:[#allocation2] sm:$0xff] %vm36_vm0, %v73_v18 }
  0x99   :  { %v81_v28 = vmul.f32 0.0, %v78_v25 }
  0x9a   :  { %v58_v22 = vadd.f32 %v57_v20, %v55_v19 }
  0x9c   :  { %v59_v23 = vadd.f32 %v58_v22, %v56_v21 }
  0x9e   :  { %60 = vadd.xlane.f32.xlu0 %v59_v23 }
  0x9f   :  { %v87_v24 = vld [vmem:[#allocation2] sm:$0xff] }
  0xa0   :  { %88 = vst.msk [vmem:[%s147_s1] sm:$0xff] %vm36_vm0, %v87_v24 }
 0x127   :  { %v61_v27 = vpop.xlane.xlu0 %60 }
 0x128   :  { %v77_v29 = vadd.f32 %v76_v26, %v61_v27 }
 0x12a   :  { %v82_v30 = vadd.f32 %v81_v28, %v77_v29 }
 0x12c   :  { %83 = vst.msk [vmem:[#allocation3] sm:$0xff] %vm36_vm0, %v82_v30 }
 0x133   :  { %v89_v31 = vld [vmem:[#allocation3] sm:$0xff] }
 0x134   :  { %90 = vst.msk [vmem:[%s148_s2] sm:$0xff] %vm36_vm0, %v89_v31 }

// kernel: _batch_norm3d_train.3
= control target key start
LH: loop header
LB: loop body
LE: loop exit
PB: predicated region body
PF: predicated region fallthrough
CT: control target
= control target key end

     0   :  { %v48_v0 = vmov 0   ;;  %s99_s1 = inlined_call_operand.vmem [shape: f32[8,1], index: 1, kind: input, shape index: {}]   ;;  %s100_s2 = inlined_call_operand.vmem [shape: f32[8,1], index: 2, kind: input, shape index: {}]   ;;  %s101_s0 = inlined_call_operand.vmem [shape: f32[8,512], index: 0, kind: input, shape index: {}]   ;;  %s102_s3 = inlined_call_operand.vmem [shape: f32[8,512], index: 3, kind: output, shape index: {}]  }
   0x1   :  { %47 = vset.pattern.permute.xlu0 %v48_v0  ;;  %v18_v1 = vld [vmem:[%s99_s1] sm:$0xff]  ;;  %v15_v5 = vld [vmem:[%s101_s0 + $0x8] sm:$0xff]  ;;  %v16_v6 = vld [vmem:[%s101_s0 + $0x10] sm:$0xff] }
   0x2   :  { %21 = vperm.xlu0 %47, %v18_v1   ;;  %v28_v2 = vld [vmem:[%s100_s2] sm:$0xff]  ;;  %v17_v7 = vld [vmem:[%s101_s0 + $0x18] sm:$0xff] }
   0x3   :  { %v14_v3 = vld [vmem:[%s101_s0] sm:$0xff] }
   0x6   :  { %31 = vperm.xlu0 %47, %v28_v2  }
  0x7d   :  { %v22_v4 = vpop.permute.xlu0 %21 }
  0x7e   :  { %v24_v8 = vmul.f32 %v22_v4, %v14_v3  ;;  %v25_v9 = vmul.f32 %v22_v4, %v15_v5  ;;  %v26_v10 = vmul.f32 %v22_v4, %v16_v6  ;;  %v27_v11 = vmul.f32 %v22_v4, %v17_v7 }
  0x81   :  { %v32_v12 = vpop.permute.xlu0 %31 }
  0x82   :  { %v34_v13 = vadd.f32 %v32_v12, %v24_v8  ;;  %v35_v14 = vadd.f32 %v32_v12, %v25_v9  ;;  %v36_v15 = vadd.f32 %v32_v12, %v26_v10  ;;  %v37_v16 = vadd.f32 %v32_v12, %v27_v11 }
  0x84   :  { %38 = vst [vmem:[%s102_s3] sm:$0xff] %v34_v13  ;;  %39 = vst [vmem:[%s102_s3 + $0x8] sm:$0xff] %v35_v14 }
  0x85   :  { %40 = vst [vmem:[%s102_s3 + $0x10] sm:$0xff] %v36_v15  ;;  %41 = vst [vmem:[%s102_s3 + $0x18] sm:$0xff] %v37_v16 }

</bundles_post_ra>
